<compile_context>
chip_gen: v5e
topology: v5e:2x2
jax: 0.10.0
libtpu: 0.0.40
codegen_flags: <defaults>
</compile_context>

<pallas_src>
import functools

import jax
import jax.numpy as jnp
from jax.experimental import pallas as pl
from jax.experimental.pallas import tpu as pltpu


def _round_up(x, m):
    return (x + m - 1) // m * m


def _decoder_kernel(x_ref, w_ref, b_ref, o_ref, *, nk):
    """o[i, j] = sum_k x[i, k] * w[k, j] + b[j]  (f32 accumulation in o_ref)."""
    partial = jnp.dot(x_ref[...], w_ref[...], preferred_element_type=jnp.float32)
    if nk == 1:
        # Single K pass: fused matmul + bias, no accumulator phases.
        o_ref[...] = partial + b_ref[...]
    else:
        k = pl.program_id(2)

        @pl.when(k == 0)
        def _():
            # Fuse bias into the first partial: no extra init store + RMW.
            o_ref[...] = partial + b_ref[...]

        @pl.when(k > 0)
        def _():
            o_ref[...] += partial


def prepare_decoder_params(weight, bias, *, compute_dtype=jnp.bfloat16):
    """One-time parameter preparation (outside the per-call hot path).

    Args:
      weight: (T, K) PyTorch nn.Linear layout  (K = num_patches * embed_dim)
      bias:   (T,)
    Returns:
      w_kn: (K_pad, N_pad) = weight.T zero-padded so K_pad % 128 == 0 and
            N_pad % 128 == 0, cast to compute_dtype (bf16 by default).
      b_2d: (1, N_pad) float32
    """
    N, K = weight.shape
    K_pad = _round_up(K, 128)
    N_pad = _round_up(N, 128)
    w_kn = jnp.zeros((K_pad, N_pad), dtype=compute_dtype)
    w_kn = w_kn.at[:K, :N].set(weight.T.astype(compute_dtype))
    b_2d = jnp.zeros((1, N_pad), dtype=jnp.float32)
    b_2d = b_2d.at[0, :N].set(bias.astype(jnp.float32))
    return w_kn, b_2d


def patchtst_decoder_forward(x, w_kn, b_2d, target_seq_size,
                             *, compute_dtype=jnp.bfloat16):
    """Pallas implementation of PatchTSTDecoder.forward.

    Args:
      x:    (B, C, num_patches, embed_dim)
      w_kn: prepared weight (K_pad, N_pad), see prepare_decoder_params
      b_2d: prepared bias (1, N_pad) float32
    Returns:
      (B, C, target_seq_size) float32
    """
    B, C, P, E = x.shape
    M = B * C
    K = P * E
    N = target_seq_size
    K_pad, N_pad = w_kn.shape

    # Flatten(start_dim=-2) fused with batch/channel; GEMM inputs in bf16.
    x2d = x.reshape(M, K).astype(compute_dtype)

    # ---- tile selection ----------------------------------------------------
    # bf16 needs sublane multiples of 16; cap tm at 128 so larger M exposes
    # multiple parallel blocks (v7x megacore) and keeps v5e's MXU cadence.
    sub_align = 16 if jnp.dtype(compute_dtype) == jnp.dtype(jnp.bfloat16) else 8
    tm = _round_up(min(M, 128), sub_align)
    M_pad = _round_up(M, tm)
    tn = 128

    if K_pad <= 2048:
        tk = K_pad          # single K pass; weight stays VMEM-resident
    elif K_pad % 1024 == 0:
        tk = 1024
    elif K_pad % 512 == 0:
        tk = 512
    elif K_pad % 256 == 0:
        tk = 256
    else:
        tk = 128
    nk = K_pad // tk

    # Only pad activations when actually needed (common case: no copy).
    if M_pad != M or K_pad != K:
        x2d = jnp.pad(x2d, ((0, M_pad - M), (0, K_pad - K)))

    nj = N_pad // tn
    ni = M_pad // tm

    # ---- VMEM budget (double-buffered inputs + resident f32 output tile) ---
    in_bytes = jnp.dtype(compute_dtype).itemsize
    vmem_needed = (2 * (tm * tk + tk * tn) * in_bytes
                   + 2 * tn * 4 + 2 * tm * tn * 4)
    try:
        vmem_cap = getattr(pltpu.get_tpu_info(), "vmem_capacity_bytes",
                           64 * 2**20)
    except Exception:  # pragma: no cover - conservative fallback (v7x minimum)
        vmem_cap = 64 * 2**20
    vmem_limit = int(min(int(0.75 * vmem_cap),
                         max(8 * 2**20, 4 * vmem_needed)))

    cost = pl.CostEstimate(
        flops=2 * M_pad * K_pad * N_pad,
        transcendentals=0,
        bytes_accessed=(M_pad * K_pad * in_bytes     # activations
                        + K_pad * N_pad * in_bytes   # weight (fetched once)
                        + N_pad * 4                  # bias
                        + M_pad * N_pad * 4),        # output
    )

    kernel = functools.partial(_decoder_kernel, nk=nk)

    if nk == 1:
        # N outer / M inner: weight block index constant across M -> weight is
        # DMA'd into VMEM once and reused for every M block.
        grid = (nj, ni)
        in_specs = [
            pl.BlockSpec((tm, K_pad), lambda j, i: (i, 0)),   # activations
            pl.BlockSpec((K_pad, tn), lambda j, i: (0, j)),   # weight (resident)
            pl.BlockSpec((1, tn), lambda j, i: (0, j)),       # bias
        ]
        out_spec = pl.BlockSpec((tm, tn), lambda j, i: (i, j))
        dim_sem = ("parallel", "parallel")
    else:
        # Large-K fallback: reduction axis last, f32 output block resident.
        grid = (nj, ni, nk)
        in_specs = [
            pl.BlockSpec((tm, tk), lambda j, i, k: (i, k)),
            pl.BlockSpec((tk, tn), lambda j, i, k: (k, j)),
            pl.BlockSpec((1, tn), lambda j, i, k: (0, j)),
        ]
        out_spec = pl.BlockSpec((tm, tn), lambda j, i, k: (i, j))
        dim_sem = ("parallel", "parallel", "arbitrary")

    out2d = pl.pallas_call(
        kernel,
        out_shape=jax.ShapeDtypeStruct((M_pad, N_pad), jnp.float32),
        grid_spec=pltpu.PrefetchScalarGridSpec(
            num_scalar_prefetch=0,
            grid=grid,
            in_specs=in_specs,
            out_specs=out_spec,
        ),
        compiler_params=pltpu.CompilerParams(
            dimension_semantics=dim_sem,
            vmem_limit_bytes=vmem_limit,
        ),
        cost_estimate=cost,
    )(x2d, w_kn, b_2d)

    # Unpad + reshape. Dropout(p=0.0) / inference is identity.
    return out2d[:M, :N].reshape(B, C, N)


def _reference_forward(x, weight, bias):
    B, C, P, E = x.shape
    x2d = x.reshape(B, C, P * E)
    return jnp.einsum("bck,nk->bcn", x2d, weight) + bias


if __name__ == "__main__":
    # Module hyperparameters (small, consistent with the PyTorch module).
    batch = 2
    num_channels = 4
    num_patches = 8
    embed_dim = 32
    target_seq_size = 64

    key = jax.random.PRNGKey(0)
    kx, kw, kb = jax.random.split(key, 3)

    x = jax.random.normal(
        kx, (batch, num_channels, num_patches, embed_dim), dtype=jnp.float32
    )

    # Deterministic parameter init (nn.Linear-style uniform bound).
    in_features = embed_dim * num_patches
    bound = 1.0 / (in_features ** 0.5)
    weight = jax.random.uniform(
        kw, (target_seq_size, in_features), minval=-bound, maxval=bound,
        dtype=jnp.float32,
    )
    bias = jax.random.uniform(
        kb, (target_seq_size,), minval=-bound, maxval=bound, dtype=jnp.float32
    )

    # One-time parameter preparation (transpose + lane padding + bf16 cast).
    w_kn, b_2d = prepare_decoder_params(weight, bias,
                                        compute_dtype=jnp.bfloat16)

    out = patchtst_decoder_forward(x, w_kn, b_2d, target_seq_size,
                                   compute_dtype=jnp.bfloat16)
    out = jax.block_until_ready(out)

    ref = _reference_forward(x, weight, bias)
    assert out.shape == (batch, num_channels, target_seq_size)
    # bf16 GEMM inputs with f32 accumulation vs f32 reference.
    assert jnp.allclose(out, ref, atol=3e-2, rtol=3e-2), "mismatch vs reference"

    print("KERNEL_OK")
</pallas_src>

<mosaic_0001>
module attributes {stable_mosaic.version = 11 : i64} {
  func.func @_decoder_kernel(%arg0: i32, %arg1: i32, %arg2: memref<16x256xbf16, #tpu.memory_space<vmem>>, %arg3: memref<256x128xbf16, #tpu.memory_space<vmem>>, %arg4: memref<1x128xf32, #tpu.memory_space<vmem>>, %arg5: memref<16x128xf32, #tpu.memory_space<vmem>>) attributes {dimension_semantics = [#tpu.dimension_semantics<parallel>, #tpu.dimension_semantics<parallel>], iteration_bounds = array<i64: 1, 1>, scalar_prefetch = 0 : i64, scratch_operands = 0 : i64, tpu.core_type = #tpu.core_type<tc>, window_params = [{transform_indices = @transform_0, window_bounds = array<i64: 16, 256>}, {transform_indices = @transform_1, window_bounds = array<i64: 256, 128>}, {transform_indices = @transform_2, window_bounds = array<i64: 1, 128>}, {transform_indices = @transform_3, window_bounds = array<i64: 16, 128>}]} {
    %c0 = arith.constant 0 : index
    %c0_0 = arith.constant 0 : index
    %0 = vector.load %arg2[%c0, %c0_0] : memref<16x256xbf16, #tpu.memory_space<vmem>>, vector<16x256xbf16>
    %c0_1 = arith.constant 0 : index
    %c0_2 = arith.constant 0 : index
    %1 = vector.load %arg3[%c0_1, %c0_2] : memref<256x128xbf16, #tpu.memory_space<vmem>>, vector<256x128xbf16>
    %cst = arith.constant dense<0.000000e+00> : vector<16x128xf32>
    %2 = tpu.matmul %0, %1, %cst {dimension_numbers = #tpu.dot_dimension_numbers<[1], [0], [0], [1], [0, 0, 1, 1], [], []>} : vector<16x256xbf16>, vector<256x128xbf16>, vector<16x128xf32> -> vector<16x128xf32>
    %c0_3 = arith.constant 0 : index
    %c0_4 = arith.constant 0 : index
    %3 = vector.load %arg4[%c0_3, %c0_4] : memref<1x128xf32, #tpu.memory_space<vmem>>, vector<1x128xf32>
    %4 = vector.broadcast %3 : vector<1x128xf32> to vector<16x128xf32>
    %5 = arith.addf %2, %4 : vector<16x128xf32>
    %c0_5 = arith.constant 0 : index
    %c0_6 = arith.constant 0 : index
    %6 = vector.load %arg5[%c0_5, %c0_6] : memref<16x128xf32, #tpu.memory_space<vmem>>, vector<16x128xf32>
    tpu.vector_store %arg5[%c0_5, %c0_6], %5 {strides = array<i32>} : memref<16x128xf32, #tpu.memory_space<vmem>>, vector<16x128xf32>,
    return
  }
  func.func @transform_0(%arg0: i32, %arg1: i32) -> (i32, i32) {
    %c0_i32 = arith.constant 0 : i32
    %c0_i32_0 = arith.constant 0 : i32
    return %arg1, %c0_i32 : i32, i32
  }
  func.func @transform_1(%arg0: i32, %arg1: i32) -> (i32, i32) {
    %c0_i32 = arith.constant 0 : i32
    %c0_i32_0 = arith.constant 0 : i32
    return %c0_i32, %arg0 : i32, i32
  }
  func.func @transform_2(%arg0: i32, %arg1: i32) -> (i32, i32) {
    %c0_i32 = arith.constant 0 : i32
    %c0_i32_0 = arith.constant 0 : i32
    return %c0_i32, %arg0 : i32, i32
  }
  func.func @transform_3(%arg0: i32, %arg1: i32) -> (i32, i32) {
    %c0_i32 = arith.constant 0 : i32
    return %arg1, %arg0 : i32, i32
  }
}

</mosaic_0001>

<bundles_post_ra>
// kernel: tpu_custom_call.1
= control target key start
LH: loop header
LB: loop body
LE: loop exit
PB: predicated region body
PF: predicated region fallthrough
CT: control target
= control target key end

     0   :  { %8 = vsyncpa [#allocation3], 0  ;;  %s462_s0 = inlined_call_operand.hbm [shape: bf16[16,256], index: 0, kind: input, shape index: {}]   ;;  %s463_s1 = inlined_call_operand.hbm [shape: bf16[256,128], index: 1, kind: input, shape index: {}]   ;;  %s464_s2 = inlined_call_operand.vmem [shape: f32[1,128], index: 2, kind: input, shape index: {}]   ;;  %s465_s3 = inlined_call_operand.hbm [shape: f32[16,128], index: 3, kind: output, shape index: {}]  }
   0x1   :  { %9 = vsyncpa [#allocation6], 0 }
   0x2   :  { %10 = vsyncpa [#allocation4], 0  ;;  %s15_s14 = sshll.u32 %s462_s0, 4  ;;  %s417_s15 = smov [#allocation2]   ;;  %s16_s14 = int_to_ptr.hbm [resolvable:$true] %s15_s14 }
   0x3   :  { %s17_s16 = sshll.u32 %s417_s15, 4  ;;  %s28_s19 = sshll.u32 %s463_s1, 4  ;;  %s18_s16 = int_to_ptr.vmem [resolvable:$true] %s17_s16  ;;  %s29_s19 = int_to_ptr.hbm [resolvable:$true] %s28_s19 }
   0x4   :  { %s418_s20 = smov 128   ;;  %s419_s21 = smov 8  }
   0x5   :  { %23 = dma.hbm_to_vmem [thread:$0]  %s16_s14, 256, %s18_s16, [#allocation3], %s418_s20, %s418_s20, %s419_s21  }
   0x6   :  { %s420_s22 = smov [#allocation5]   ;;  %s421_s24 = smov 64  }
   0x7   :  { %s30_s23 = sshll.u32 %s420_s22, 4  ;;  %s422_s0 = smov 4   ;;  %s31_s23 = int_to_ptr.vmem [resolvable:$true] %s30_s23 }
   0x8   :  { %36 = dma.hbm_to_vmem [thread:$0]  %s29_s19, 2048, %s31_s23, [#allocation6], %s421_s24, %s421_s24, %s422_s0  }
   0x9   :  { %411 = dma.done.wait [#allocation3], 256  }
   0xa   :  { %412 = vsyncadd [#allocation3], 4294967040 }
   0xb   :  { %413 = dma.done.wait [#allocation6], 2048  }
   0xc   :  { %414 = vsyncadd [#allocation6], 4294965248  ;;  %v322_v0 = vld [vmem:[#allocation5 + $0x38] sm:$0xff]  ;;  %v321_v2 = vld [vmem:[#allocation5 + $0x30] sm:$0xff]  ;;  %s423_s26 = smov [#allocation7]   ;;  %s227_s30 = sshll.u32 %s465_s3, 4  ;;  %s228_s30 = int_to_ptr.hbm [resolvable:$true] %s227_s30 }
   0xd   :  { %v330_v1 = vld [vmem:[#allocation5 + $0x78] sm:$0xff]  ;;  %191 = vmatpush.bf16.msra.mxu0 %v322_v0  ;;  %v329_v3 = vld [vmem:[#allocation5 + $0x70] sm:$0xff]  ;;  %v320_v4 = vld [vmem:[#allocation5 + $0x28] sm:$0xff]  ;;  %s225_s27 = sshll.u32 %s423_s26, 4  ;;  %s226_s27 = int_to_ptr.vmem [resolvable:$true] %s225_s27 }
   0xe   :  { %205 = vmatpush.bf16.msra.mxu1 %v330_v1  ;;  %v328_v5 = vld [vmem:[#allocation5 + $0x68] sm:$0xff]  ;;  %v319_v6 = vld [vmem:[#allocation5 + $0x20] sm:$0xff]  ;;  %v318_v8 = vld [vmem:[#allocation5 + $0x18] sm:$0xff] }
   0xf   :  { %v327_v7 = vld [vmem:[#allocation5 + $0x60] sm:$0xff]  ;;  %v326_v9 = vld [vmem:[#allocation5 + $0x58] sm:$0xff]  ;;  %v317_v10 = vld [vmem:[#allocation5 + $0x10] sm:$0xff] }
  0x10   :  { %v325_v11 = vld [vmem:[#allocation5 + $0x50] sm:$0xff]  ;;  %v316_v12 = vld [vmem:[#allocation5 + $0x8] sm:$0xff]  ;;  %v315_v14 = vld [vmem:[#allocation5] sm:$0xff] }
  0x11   :  { %192 = vmatpush.bf16.msra.mxu0 %v321_v2  ;;  %v324_v13 = vld [vmem:[#allocation5 + $0x48] sm:$0xff]  ;;  %v323_v15 = vld [vmem:[#allocation5 + $0x40] sm:$0xff]  ;;  %v243_v16 = vld [vmem:[#allocation2] sm:$0xf] }
  0x12   :  { %206 = vmatpush.bf16.msra.mxu1 %v329_v3  ;;  %v314_v17 = vld [vmem:[#allocation2 + $0x4] sm:$0xf0]  ;;  %v313_v18 = vld [vmem:[#allocation2 + $0x4] sm:$0xf]  ;;  %v245_v19 = vld [vmem:[#allocation2 + $0x8] sm:$0xf0] }
  0x13   :  { %v244_v20 = vor.u32 %v314_v17, %v243_v16  ;;  %v248_v21 = vor.u32 %v313_v18, %v245_v19  ;;  %v338_v22 = vld [vmem:[%s464_s2] ss:$0 sm:$0xff] }
  0x15   :  { %193 = vmatpush.bf16.msra.mxu0 %v320_v4 }
  0x16   :  { %207 = vmatpush.bf16.msra.mxu1 %v328_v5 }
  0x19   :  { %194 = vmatpush.bf16.msra.mxu0 %v319_v6 }
  0x1a   :  { %208 = vmatpush.bf16.msra.mxu1 %v327_v7 }
  0x1d   :  { %195 = vmatpush.bf16.msra.mxu0 %v318_v8 }
  0x1e   :  { %209 = vmatpush.bf16.msra.mxu1 %v326_v9 }
  0x21   :  { %196 = vmatpush.bf16.msra.mxu0 %v317_v10 }
  0x22   :  { %210 = vmatpush.bf16.msra.mxu1 %v325_v11 }
  0x25   :  { %197 = vmatpush.bf16.msra.mxu0 %v316_v12 }
  0x26   :  { %211 = vmatpush.bf16.msra.mxu1 %v324_v13 }
  0x29   :  { %198 = vmatpush.bf16.msra.mxu0 %v315_v14 }
  0x2a   :  { %212 = vmatpush.bf16.msra.mxu1 %v323_v15 }
  0x2c   :  { %199 = vmatmul.bf16.vlgmr.msra.gmra.mxu0 %v244_v20 }
  0x2d   :  { %213 = vmatmul.bf16.vlgmr.msra.gmra.mxu1 %v248_v21 }
  0xa9   :  { %v200_v23 = vpop.f32.mrf.mxu0 }
  0xaa   :  { %v214_v24 = vpop.f32.mrf.mxu1  ;;  %v201_v25 = vadd.f32 %v338_v22, %v200_v23 }
  0xac   :  { %v215_v26 = vadd.f32 %v214_v24, %v201_v25 }
  0xae   :  { %219 = vst [vmem:[#allocation7] sm:$0xff] %v215_v26 }
  0xb1   :  { %v202_v27 = vpop.f32.mrf.mxu0 }
  0xb2   :  { %v203_v28 = vadd.f32 %v338_v22, %v202_v27  ;;  %v216_v29 = vpop.f32.mrf.mxu1 }
  0xb4   :  { %v217_v30 = vadd.f32 %v216_v29, %v203_v28 }
  0xb6   :  { %220 = vst [vmem:[#allocation7 + $0x8] sm:$0xff] %v217_v30 }
  0xb7   :  { %233 = dma.vmem_to_hbm [thread:$0]  %s226_s27, 256, %s228_s30, [#allocation4], %s418_s20, %s418_s20, %s419_s21  }
  0xb8   :  { %415 = dma.done.wait [#allocation4], 256  }
  0xb9   :  { %416 = vsyncadd [#allocation4], 4294967040 }
  0xba   :  { %238 = vsyncpa [#allocation3], 1 }
  0xbb   :  { %239 = vsyncpa [#allocation6], 1 }
  0xbc   :  { %240 = vsyncpa [#allocation4], 1 }

</bundles_post_ra>
